<compile_context>
chip_gen: v7x
topology: tpu7x:2x2x1
jax: 0.10.0
libtpu: 0.0.40
codegen_flags: <defaults>
</compile_context>

<pallas_src>
import jax
import jax.numpy as jnp
from jax.experimental import pallas as pl
from jax.experimental.pallas import tpu as pltpu


def _round_up(x: int, m: int) -> int:
    return (x + m - 1) // m * m


# ---------------------------------------------------------------------------
# Kernel
# ---------------------------------------------------------------------------
def _make_embeddings_kernel(eps: float):
    def embeddings_kernel(ids_ref, table_ref, gamma_ref, beta_ref, out_ref):
        TM = out_ref.shape[0]
        V = table_ref.shape[0]

        # (TM, 1) id columns -> broadcast along lanes (no XLU transpose).
        wid = ids_ref[:, 0:1]   # word ids
        cid = ids_ref[:, 1:2]   # char-position ids (pre-offset by V0)
        pid = ids_ref[:, 2:3]   # word-position ids (pre-offset by V0+V1)

        # Single iota, three compares OR-ed, one cast -> multi-hot (TM, V).
        # Id ranges are disjoint, so one matmul against the concatenated
        # table sums the three embedding gathers exactly.
        iota = jax.lax.broadcasted_iota(jnp.int32, (TM, V), 1)
        multi_hot = ((iota == wid) | (iota == cid) | (iota == pid)).astype(
            jnp.float32)

        emb = jnp.dot(multi_hot, table_ref[...],
                      preferred_element_type=jnp.float32)         # (TM, H) f32

        # LayerNorm over hidden dim (biased variance, eps inside rsqrt).
        mean = jnp.mean(emb, axis=-1, keepdims=True)
        var = jnp.mean((emb - mean) ** 2, axis=-1, keepdims=True)
        norm = (emb - mean) * jax.lax.rsqrt(var + eps)
        out = norm * gamma_ref[...] + beta_ref[...]

        # Dropout is identity in eval mode.
        out_ref[...] = out.astype(out_ref.dtype)

    return embeddings_kernel


# ---------------------------------------------------------------------------
# One-time (model-init) parameter preprocessing — hoisted out of the forward.
# ---------------------------------------------------------------------------
def prepare_embedding_params(word_emb, char_pos_emb, word_pos_emb,
                             ln_gamma, ln_beta):
    V0, H = word_emb.shape
    V1 = char_pos_emb.shape[0]
    V2 = word_pos_emb.shape[0]
    V_tot = V0 + V1 + V2
    V_pad = _round_up(V_tot, 128)      # MXU-aligned K, no masked-lane compares

    table = jnp.concatenate(
        [word_emb.astype(jnp.float32),
         char_pos_emb.astype(jnp.float32),
         word_pos_emb.astype(jnp.float32)], axis=0)
    if V_pad != V_tot:
        table = jnp.pad(table, ((0, V_pad - V_tot), (0, 0)))

    gamma2 = ln_gamma.reshape(1, H).astype(jnp.float32)
    beta2 = ln_beta.reshape(1, H).astype(jnp.float32)

    return {
        "table": table,            # (V_pad, H) f32
        "gamma": gamma2,           # (1, H)     f32
        "beta": beta2,             # (1, H)     f32
        "offsets": (0, V0, V0 + V1),
        "hidden_size": H,
    }


# ---------------------------------------------------------------------------
# Per-call forward wrapper
# ---------------------------------------------------------------------------
def _choose_row_tile(M: int, row_tile: int) -> int:
    """Prefer >=2 grid steps when splittable (dual-TC v7x), cap tile size."""
    if M <= 8:
        return 8
    half = _round_up(pl.cdiv(M, 2), 8)
    return min(row_tile, half)


def ann_bert_embeddings(input_ids, char_position_ids, word_position_ids,
                        params, *, layer_norm_eps=1e-12, row_tile=512):
    B, S = input_ids.shape
    table = params["table"]
    gamma2 = params["gamma"]
    beta2 = params["beta"]
    off_w, off_c, off_p = params["offsets"]
    V_pad, H = table.shape
    M = B * S

    # Fused id streams with offsets into the concatenated table: one stack.
    ids3 = jnp.stack(
        [input_ids.reshape(M).astype(jnp.int32) + off_w,
         char_position_ids.reshape(M).astype(jnp.int32) + off_c,
         word_position_ids.reshape(M).astype(jnp.int32) + off_p],
        axis=1)                                             # (M, 3)

    TM = _choose_row_tile(M, row_tile)
    M_pad = _round_up(M, TM)
    num_tiles = M_pad // TM

    if M_pad != M:
        # Pad rows point at the base row of each sub-table (well-defined ids);
        # their outputs are sliced off below.
        pad_rows = jnp.broadcast_to(
            jnp.array([[off_w, off_c, off_p]], jnp.int32), (M_pad - M, 3))
        ids3 = jnp.concatenate([ids3, pad_rows], axis=0)

    kernel = _make_embeddings_kernel(layer_norm_eps)

    out = pl.pallas_call(
        kernel,
        out_shape=jax.ShapeDtypeStruct((M_pad, H), jnp.float32),
        grid_spec=pltpu.PrefetchScalarGridSpec(
            num_scalar_prefetch=0,
            grid=(num_tiles,),
            in_specs=[
                pl.BlockSpec((TM, 3), lambda i: (i, 0)),       # fused ids
                pl.BlockSpec((V_pad, H), lambda i: (0, 0)),    # concat table
                pl.BlockSpec((1, H), lambda i: (0, 0)),        # LN gamma
                pl.BlockSpec((1, H), lambda i: (0, 0)),        # LN beta
            ],
            out_specs=pl.BlockSpec((TM, H), lambda i: (i, 0)),
        ),
        compiler_params=pltpu.CompilerParams(
            dimension_semantics=("parallel",)),
    )(ids3, table, gamma2, beta2)

    return out[:M].reshape(B, S, H)


# ---------------------------------------------------------------------------
# Pure-JAX reference (matches the PyTorch forward in eval mode)
# ---------------------------------------------------------------------------
def reference(input_ids, char_position_ids, word_position_ids,
              word_emb, char_pos_emb, word_pos_emb, ln_gamma, ln_beta, eps):
    emb = (word_emb[input_ids]
           + char_pos_emb[char_position_ids]
           + word_pos_emb[word_position_ids])
    mean = jnp.mean(emb, axis=-1, keepdims=True)
    var = jnp.mean((emb - mean) ** 2, axis=-1, keepdims=True)
    norm = (emb - mean) * jax.lax.rsqrt(var + eps)
    return norm * ln_gamma + ln_beta


if __name__ == "__main__":
    # Small config consistent with AnnBertConfig semantics
    vocab_size = 67
    hidden_size = 32
    max_char_position_embeddings = 64
    max_word_position_embeddings = 16
    pad_token_id = 0
    layer_norm_eps = 1e-12
    initializer_range = 0.02

    B, S = 2, 8

    key = jax.random.PRNGKey(0)
    k_ids, k_w, k_c, k_p = jax.random.split(key, 4)

    input_ids = jax.random.randint(k_ids, (B, S), 0, vocab_size,
                                   dtype=jnp.int32)

    # Deterministic parameter init (normal * initializer_range), pad row zeroed
    word_emb = initializer_range * jax.random.normal(
        k_w, (vocab_size, hidden_size), jnp.float32)
    word_emb = word_emb.at[pad_token_id].set(0.0)
    char_pos_emb = initializer_range * jax.random.normal(
        k_c, (max_char_position_embeddings, hidden_size), jnp.float32)
    word_pos_emb = initializer_range * jax.random.normal(
        k_p, (max_word_position_embeddings, hidden_size), jnp.float32)
    ln_gamma = jnp.ones((hidden_size,), jnp.float32)
    ln_beta = jnp.zeros((hidden_size,), jnp.float32)

    # Default position ids, as in the PyTorch forward
    char_position_ids = jnp.broadcast_to(
        jnp.arange(S, dtype=jnp.int32), (B, S))
    word_position_ids = jnp.zeros((B, S), dtype=jnp.int32)

    # One-time preprocessing (model-init), NOT part of the per-call path.
    params = prepare_embedding_params(
        word_emb, char_pos_emb, word_pos_emb, ln_gamma, ln_beta)
    params = jax.tree_util.tree_map(
        lambda x: jax.block_until_ready(x) if isinstance(x, jax.Array) else x,
        params)

    out = ann_bert_embeddings(
        input_ids, char_position_ids, word_position_ids, params,
        layer_norm_eps=layer_norm_eps)
    out = jax.block_until_ready(out)

    ref = reference(input_ids, char_position_ids, word_position_ids,
                    word_emb, char_pos_emb, word_pos_emb,
                    ln_gamma, ln_beta, layer_norm_eps)

    assert out.shape == (B, S, hidden_size)
    assert jnp.allclose(out, ref, atol=1e-5, rtol=1e-5), "mismatch vs reference"
    print("KERNEL_OK")
</pallas_src>

<mosaic_0001>
module attributes {stable_mosaic.version = 11 : i64} {
  func.func @embeddings_kernel(%arg0: i32, %arg1: memref<8x3xi32, #tpu.memory_space<vmem>>, %arg2: memref<256x32xf32, #tpu.memory_space<vmem>>, %arg3: memref<1x32xf32, #tpu.memory_space<vmem>>, %arg4: memref<1x32xf32, #tpu.memory_space<vmem>>, %arg5: memref<8x32xf32, #tpu.memory_space<vmem>>) attributes {dimension_semantics = [#tpu.dimension_semantics<parallel>], iteration_bounds = array<i64: 2>, scalar_prefetch = 0 : i64, scratch_operands = 0 : i64, tpu.core_type = #tpu.core_type<tc>, window_params = [{transform_indices = @transform_0, window_bounds = array<i64: 8, 3>}, {pipeline_mode = #tpu.pipeline_mode<synchronous>, transform_indices = @transform_1, window_bounds = array<i64: 256, 32>}, {pipeline_mode = #tpu.pipeline_mode<synchronous>, transform_indices = @transform_2, window_bounds = array<i64: 1, 32>}, {pipeline_mode = #tpu.pipeline_mode<synchronous>, transform_indices = @transform_3, window_bounds = array<i64: 1, 32>}, {transform_indices = @transform_4, window_bounds = array<i64: 8, 32>}]} {
    %c0 = arith.constant 0 : index
    %c0_0 = arith.constant 0 : index
    %0 = vector.load %arg1[%c0, %c0_0] : memref<8x3xi32, #tpu.memory_space<vmem>>, vector<8x1xi32>
    %c0_1 = arith.constant 0 : index
    %c1 = arith.constant 1 : index
    %1 = vector.load %arg1[%c0_1, %c1] : memref<8x3xi32, #tpu.memory_space<vmem>>, vector<8x1xi32>
    %c0_2 = arith.constant 0 : index
    %c2 = arith.constant 2 : index
    %2 = vector.load %arg1[%c0_2, %c2] : memref<8x3xi32, #tpu.memory_space<vmem>>, vector<8x1xi32>
    %3 = tpu.iota {dimensions = array<i32: 1>} : vector<8x256xi32>
    %4 = vector.broadcast %0 : vector<8x1xi32> to vector<8x256xi32>
    %5 = arith.cmpi eq, %3, %4 : vector<8x256xi32>
    %6 = vector.broadcast %1 : vector<8x1xi32> to vector<8x256xi32>
    %7 = arith.cmpi eq, %3, %6 : vector<8x256xi32>
    %8 = arith.ori %5, %7 : vector<8x256xi1>
    %9 = vector.broadcast %2 : vector<8x1xi32> to vector<8x256xi32>
    %10 = arith.cmpi eq, %3, %9 : vector<8x256xi32>
    %11 = arith.ori %8, %10 : vector<8x256xi1>
    %12 = arith.extui %11 : vector<8x256xi1> to vector<8x256xi32>
    %13 = arith.sitofp %12 : vector<8x256xi32> to vector<8x256xf32>
    %c0_3 = arith.constant 0 : index
    %c0_4 = arith.constant 0 : index
    %14 = vector.load %arg2[%c0_3, %c0_4] : memref<256x32xf32, #tpu.memory_space<vmem>>, vector<256x32xf32>
    %cst = arith.constant dense<0.000000e+00> : vector<8x32xf32>
    %15 = tpu.matmul %13, %14, %cst {dimension_numbers = #tpu.dot_dimension_numbers<[1], [0], [0], [1], [0, 0, 1, 1], [], []>} : vector<8x256xf32>, vector<256x32xf32>, vector<8x32xf32> -> vector<8x32xf32>
    %cst_5 = arith.constant dense<0.000000e+00> : vector<8xf32>
    %16 = vector.multi_reduction <add>, %15, %cst_5 [1] : vector<8x32xf32> to vector<8xf32>
    %17 = vector.shape_cast %16 : vector<8xf32> to vector<8x1xf32>
    %cst_6 = arith.constant 3.200000e+01 : f32
    %18 = vector.broadcast %cst_6 : f32 to vector<8x1xf32>
    %19 = arith.divf %17, %18 : vector<8x1xf32>
    %20 = vector.broadcast %19 : vector<8x1xf32> to vector<8x32xf32>
    %21 = arith.subf %15, %20 : vector<8x32xf32>
    %22 = arith.mulf %21, %21 : vector<8x32xf32>
    %cst_7 = arith.constant dense<0.000000e+00> : vector<8xf32>
    %23 = vector.multi_reduction <add>, %22, %cst_7 [1] : vector<8x32xf32> to vector<8xf32>
    %24 = vector.shape_cast %23 : vector<8xf32> to vector<8x1xf32>
    %cst_8 = arith.constant 3.200000e+01 : f32
    %25 = vector.broadcast %cst_8 : f32 to vector<8x1xf32>
    %26 = arith.divf %24, %25 : vector<8x1xf32>
    %27 = vector.broadcast %19 : vector<8x1xf32> to vector<8x32xf32>
    %28 = arith.subf %15, %27 : vector<8x32xf32>
    %cst_9 = arith.constant 9.99999996E-13 : f32
    %29 = vector.broadcast %cst_9 : f32 to vector<8x1xf32>
    %30 = arith.addf %26, %29 : vector<8x1xf32>
    %31 = math.rsqrt %30 : vector<8x1xf32>
    %32 = vector.broadcast %31 : vector<8x1xf32> to vector<8x32xf32>
    %33 = arith.mulf %28, %32 : vector<8x32xf32>
    %c0_10 = arith.constant 0 : index
    %c0_11 = arith.constant 0 : index
    %34 = vector.load %arg3[%c0_10, %c0_11] : memref<1x32xf32, #tpu.memory_space<vmem>>, vector<1x32xf32>
    %35 = vector.broadcast %34 : vector<1x32xf32> to vector<8x32xf32>
    %36 = arith.mulf %33, %35 : vector<8x32xf32>
    %c0_12 = arith.constant 0 : index
    %c0_13 = arith.constant 0 : index
    %37 = vector.load %arg4[%c0_12, %c0_13] : memref<1x32xf32, #tpu.memory_space<vmem>>, vector<1x32xf32>
    %38 = vector.broadcast %37 : vector<1x32xf32> to vector<8x32xf32>
    %39 = arith.addf %36, %38 : vector<8x32xf32>
    %c0_14 = arith.constant 0 : index
    %c0_15 = arith.constant 0 : index
    %40 = vector.load %arg5[%c0_14, %c0_15] : memref<8x32xf32, #tpu.memory_space<vmem>>, vector<8x32xf32>
    tpu.vector_store %arg5[%c0_14, %c0_15], %39 {strides = array<i32>} : memref<8x32xf32, #tpu.memory_space<vmem>>, vector<8x32xf32>,
    return
  }
  func.func @transform_0(%arg0: i32) -> (i32, i32) {
    %c0_i32 = arith.constant 0 : i32
    %c0_i32_0 = arith.constant 0 : i32
    return %arg0, %c0_i32 : i32, i32
  }
  func.func @transform_1(%arg0: i32) -> (i32, i32) {
    %c0_i32 = arith.constant 0 : i32
    %c0_i32_0 = arith.constant 0 : i32
    %c0_i32_1 = arith.constant 0 : i32
    return %c0_i32, %c0_i32_0 : i32, i32
  }
  func.func @transform_2(%arg0: i32) -> (i32, i32) {
    %c0_i32 = arith.constant 0 : i32
    %c0_i32_0 = arith.constant 0 : i32
    %c0_i32_1 = arith.constant 0 : i32
    return %c0_i32, %c0_i32_0 : i32, i32
  }
  func.func @transform_3(%arg0: i32) -> (i32, i32) {
    %c0_i32 = arith.constant 0 : i32
    %c0_i32_0 = arith.constant 0 : i32
    %c0_i32_1 = arith.constant 0 : i32
    return %c0_i32, %c0_i32_0 : i32, i32
  }
  func.func @transform_4(%arg0: i32) -> (i32, i32) {
    %c0_i32 = arith.constant 0 : i32
    %c0_i32_0 = arith.constant 0 : i32
    return %arg0, %c0_i32 : i32, i32
  }
}

</mosaic_0001>

<bundles_post_ra>
// kernel: tpu_custom_call.1
= control target key start
LH: loop header
LB: loop body
LE: loop exit
PB: predicated region body
PF: predicated region fallthrough
CT: control target
= control target key end

     0   :  { %9 = vsyncpa [#allocation3], 0  ;;  %s858_s0 = inlined_call_operand.vmem [shape: s32[16,3], index: 0, kind: input, shape index: {}]   ;;  %s859_s1 = inlined_call_operand.vmem [shape: f32[256,32], index: 1, kind: input, shape index: {}]   ;;  %s860_s2 = inlined_call_operand.vmem [shape: f32[1,32], index: 2, kind: input, shape index: {}]   ;;  %s861_s3 = inlined_call_operand.vmem [shape: f32[1,32], index: 3, kind: input, shape index: {}]   ;;  %s862_s4 = inlined_call_operand.hbm [shape: f32[16,32], index: 4, kind: output, shape index: {}]  }
   0x1   :  { %11 = vsyncpa [#allocation3 + $0x1], 0  ;;  %s653_s15 = smov 0   ;;  %s655_s16 = smov 0  }
   0x2   :  { %s657_s17 = smov 0   ;;  %s659_s18 = smov 0  }
   0x3 LB: > { %s674_s19 = sadd.s32 4294967295, %s621_s18   ;;  %s427_s20 = sadd.s32 4294967294, %s621_s18   ;;  %s621_s18 = sphi %s659_s18, %s868_s18   ;;  %s617_s17 = sphi %s657_s17, %s867_s17   ;;  %s613_s16 = sphi %s655_s16, %s866_s16   ;;  %s609_s15 = sphi %s653_s15, %s865_s15  }
   0x4   : > { %s678_s21 = sadd.s32 1, %s621_s18   ;;  %s113_s22 = sadd.s32 1, %s617_s17 }
   0x5   : > { %s110_s23 = ssub.s32 %s621_s18, %s678_s21  ;;  %p123_p0 = scmp.ne.s32.totalorder %s617_s17, %s613_s16 }
   0x6   : > { %p111_p1 = scmp.eq.s32.totalorder %s110_s23, 0  ;;  %p124_p2 = scmp.eq.s32.totalorder %s674_s19, 1 }
   0x7   : > { %p129_p3 = scmp.ne.s32.totalorder %s613_s16, %s609_s15  ;;  %p130_p4 = scmp.eq.s32.totalorder %s427_s20, 1 }
   0x8   : > { %s689_s24 = scalar_select %p111_p1, %s617_s17, %s113_s22  }
   0x9   : > { %p691_p5 = por %p124_p2, %p123_p0  ;;  %p695_p6 = por %p130_p4, %p129_p3 }
   0xa   : > { %p430_p7 = scmp.ge.s32.totalorder %s621_s18, 1  ;;  %p164_p8 = scmp.lt.s32.totalorder %s621_s18, 3 }
   0xc   : > { %p165_p9 = pnand %p430_p7, %p164_p8 }
   0xd   : > { %p189_p10 = scmp.lt.s32.totalorder (!%p165_p9), %s674_s19, 1  ;;  %v236_v0 = vld [vmem:[%s859_s1 + $0x80] sm:$0xff] (!%p165_p9)  ;;  %v237_v1 = vld [vmem:[%s859_s1 + $0x88] sm:$0xff] (!%p165_p9)  ;;  %v623_v2 = vmov (!%p165_p9), 0   ;;  %v624_v3 = vmov (!%p165_p9), 2   ;;  %v238_v7 = vld [vmem:[%s859_s1 + $0x90] sm:$0xff] (!%p165_p9)  ;;  %v194_v52 = vlaneseq (!%p165_p9) }
   0xe   : > { %168 = sbr.rel (%p165_p9) target bundleno = 707 (0x2c3), region = 36  ;;  %553 = vset.pattern.permute.xlu0 (!%p165_p9), %v623_v2  ;;  %555 = vset.pattern.permute.xlu1 (!%p165_p9), %v624_v3  ;;  %v478_v4 = vpack.c.bf16 (!%p165_p9), %v237_v1, %v236_v0  ;;  %v220_v5 = vld [vmem:[%s859_s1] sm:$0xff] (!%p165_p9)  ;;  %v221_v6 = vld [vmem:[%s859_s1 + $0x8] sm:$0xff] (!%p165_p9)  ;;  %v239_v9 = vld [vmem:[%s859_s1 + $0x98] sm:$0xff] (!%p165_p9)  ;;  %v625_v28 = vmov (!%p165_p9), 1   ;;  %v626_v58 = vmov (!%p165_p9), 1.0  }
   0xf   : > { %v480_v8 = vpack.c.bf16 (!%p165_p9), %v221_v6, %v220_v5  ;;  %v222_v10 = vld [vmem:[%s859_s1 + $0x10] sm:$0xff] (!%p165_p9)  ;;  %v223_v11 = vld [vmem:[%s859_s1 + $0x18] sm:$0xff] (!%p165_p9)  ;;  %v482_v12 = vpack.c.bf16 (!%p165_p9), %v239_v9, %v238_v7  ;;  %v240_v13 = vld [vmem:[%s859_s1 + $0xa0] sm:$0xff] (!%p165_p9)  ;;  %v195_v53 = vand.u32 (!%p165_p9), 127, %v194_v52  ;;  %vm322_vm10 = vcmask (!%p165_p9), 261120   ;;  %s186_s28 = sand.u32 (!%p165_p9), 1, %s613_s16  }
  0x10   : > { %479 = vmatprep.subr.bf16.mxu0 (!%p165_p9), %v478_v4  ;;  %v241_v14 = vld [vmem:[%s859_s1 + $0xa8] sm:$0xff] (!%p165_p9)  ;;  %v484_v15 = vpack.c.bf16 (!%p165_p9), %v223_v11, %v222_v10  ;;  %v224_v17 = vld [vmem:[%s859_s1 + $0x20] sm:$0xff] (!%p165_p9)  ;;  %v242_v20 = vld [vmem:[%s859_s1 + $0xb0] sm:$0xff] (!%p165_p9)  ;;  %s431_s29 = sshll.u32 (!%p165_p9), %s186_s28, 3  ;;  %s355_s20 = scalar_lea.sflag (!%p165_p9), [#allocation3], %s186_s28 }
  0x11   : > { %481 = vmatpush3.bf16.msra.mxu0 (!%p165_p9), %v480_v8  ;;  %v486_v16 = vpack.c.bf16 (!%p165_p9), %v241_v14, %v240_v13  ;;  %v225_v18 = vld [vmem:[%s859_s1 + $0x28] sm:$0xff] (!%p165_p9)  ;;  %v243_v21 = vld [vmem:[%s859_s1 + $0xb8] sm:$0xff] (!%p165_p9)  ;;  %v226_v24 = vld [vmem:[%s859_s1 + $0x30] sm:$0xff] (!%p165_p9)  ;;  %v196_v56 = vadd.s32 (!%p165_p9), 128, %v195_v53  ;;  %s188_s9 = scalar_lea.vmem (!%p165_p9), [#allocation2], %s431_s29 }
  0x12   : > { %483 = vmatprep.subr.bf16.mxu0 (!%p165_p9), %v482_v12  ;;  %v488_v22 = vpack.c.bf16 (!%p165_p9), %v225_v18, %v224_v17  ;;  %v490_v23 = vpack.c.bf16 (!%p165_p9), %v243_v21, %v242_v20  ;;  %v227_v25 = vld [vmem:[%s859_s1 + $0x38] sm:$0xff] (!%p165_p9)  ;;  %v244_v26 = vld [vmem:[%s859_s1 + $0xc0] sm:$0xff] (!%p165_p9)  ;;  %v245_v27 = vld [vmem:[%s859_s1 + $0xc8] sm:$0xff] (!%p165_p9)  ;;  %s368_s10 = sshll.u32 (!%p165_p9), %s188_s9, 4  ;;  %s817_s10 = int_to_ptr.vmem [resolvable:$true] %s368_s10 }
  0x13   : > { %v492_v29 = vpack.c.bf16 (!%p165_p9), %v227_v25, %v226_v24  ;;  %v494_v30 = vpack.c.bf16 (!%p165_p9), %v245_v27, %v244_v26  ;;  %v228_v31 = vld [vmem:[%s859_s1 + $0x40] sm:$0xff] (!%p165_p9)  ;;  %v229_v32 = vld [vmem:[%s859_s1 + $0x48] sm:$0xff] (!%p165_p9)  ;;  %v246_v33 = vld [vmem:[%s859_s1 + $0xd0] sm:$0xff] (!%p165_p9) }
  0x14   : > { %v247_v34 = vld [vmem:[%s859_s1 + $0xd8] sm:$0xff] (!%p165_p9)  ;;  %v496_v35 = vpack.c.bf16 (!%p165_p9), %v229_v32, %v228_v31  ;;  %v230_v37 = vld [vmem:[%s859_s1 + $0x50] sm:$0xff] (!%p165_p9)  ;;  %v248_v39 = vld [vmem:[%s859_s1 + $0xe0] sm:$0xff] (!%p165_p9) }
  0x15   : > { %s190_s11 = scalar_select %p189_p10, %s674_s19, 1  ;;  %485 = vmatpush3.bf16.msra.mxu0 %v484_v15  ;;  %v498_v36 = vpack.c.bf16 %v247_v34, %v246_v33  ;;  %v231_v38 = vld [vmem:[%s859_s1 + $0x58] sm:$0xff]  ;;  %v249_v40 = vld [vmem:[%s859_s1 + $0xe8] sm:$0xff]  ;;  %v232_v43 = vld [vmem:[%s859_s1 + $0x60] sm:$0xff] }
  0x16   : > { %487 = vmatprep.subr.bf16.mxu0 %v486_v16  ;;  %v500_v41 = vpack.c.bf16 %v231_v38, %v230_v37  ;;  %v502_v42 = vpack.c.bf16 %v249_v40, %v248_v39  ;;  %v233_v44 = vld [vmem:[%s859_s1 + $0x68] sm:$0xff]  ;;  %v250_v45 = vld [vmem:[%s859_s1 + $0xf0] sm:$0xff]  ;;  %v251_v46 = vld [vmem:[%s859_s1 + $0xf8] sm:$0xff] }
  0x17   : > { %s432_s5 = sshll.u32 %s190_s11, 3  ;;  %v504_v47 = vpack.c.bf16 %v233_v44, %v232_v43  ;;  %v506_v48 = vpack.c.bf16 %v251_v46, %v250_v45  ;;  %v234_v49 = vld [vmem:[%s859_s1 + $0x70] sm:$0xff]  ;;  %v235_v50 = vld [vmem:[%s859_s1 + $0x78] sm:$0xff]  ;;  %v437_v8 = vld [vmem:[%s860_s2] ss:$0 sm:$0xff]  ;;  %s559_s11 = scalar_lea.vmem %s817_s10, 128 }
  0x18   : > { %s192_s8 = scalar_lea.vmem %s858_s0, %s432_s5  ;;  %v508_v51 = vpack.c.bf16 %v235_v50, %v234_v49  ;;  %v438_v10 = vld [vmem:[%s861_s3] ss:$0 sm:$0xff]  ;;  %p560_p11 = scmp.ne.s32.totalorder %s817_s10, %s559_s11 }
  0x19   : > { %v193_v19 = vld [vmem:[%s192_s8] sm:$0xff]  ;;  %489 = vmatpush3.bf16.msra.mxu0 %v488_v22  ;;  %s440_s8 = sshll.u32 %s674_s19, 7  ;;  %s627_s19 = smov [#allocation2]  }
  0x1a   : > { %198 = vperm.xlu0 %553, %v193_v19   ;;  %210 = vperm.xlu1 %555, %v193_v19   ;;  %s815_s14 = scalar_lea.hbm %s862_s4, %s440_s8  ;;  %p561_p12 = pnand %p560_p11, %p691_p5 }
  0x1b   : > { %491 = vmatprep.subr.bf16.mxu0 %v490_v23  ;;  %s563_s22 = sshll.u32 %s627_s19, 4  ;;  %s564_s22 = int_to_ptr.vmem [resolvable:$false] %s563_s22 }
  0x1c   : > { %p562_p13 = pneg %p561_p12  ;;  %s565_s23 = scalar_lea.vmem %s564_s22, 256 }
  0x1d   : > { %493 = vmatpush3.bf16.msra.mxu0 %v492_v29  ;;  %p566_p0 = scmp.lt.s32.totalorder %s817_s10, %s564_s22  ;;  %p567_p1 = scmp.lt.s32.totalorder %s565_s23, %s559_s11 }
  0x1e   : > { %554 = vset.pattern.permute.xlu0 %v625_v28  ;;  %495 = vmatprep.subr.bf16.mxu0 %v494_v30 }
  0x1f   : > { %203 = vperm.xlu0 %554, %v193_v19   ;;  %p568_p2 = por %p567_p1, %p566_p0 }
  0x21   : > { %497 = vmatpush3.bf16.msra.mxu0 %v496_v35  ;;  %p569_p3 = pnand %p568_p2, %p562_p13 }
  0x22   : > { %499 = vmatprep.subr.bf16.mxu0 %v498_v36 }
  0x23   : > { %556 = vset.pattern.permute.xlu0 %v624_v3 }
  0x25   : > { %501 = vmatpush3.bf16.msra.mxu0 %v500_v41 }
  0x26   : > { %503 = vmatprep.subr.bf16.mxu0 %v502_v42 }
  0x29   : > { %505 = vmatpush3.bf16.msra.mxu0 %v504_v47 }
  0x2a   : > { %507 = vmatprep.subr.bf16.mxu0 %v506_v48 }
  0x2d   : > { %509 = vmatpush3.bf16.msra.mxu0 %v508_v51 }
  0x99   : > { %v199_v54 = vpop.permute.xlu0 %198  ;;  %v211_v55 = vpop.permute.xlu1 %210 }
  0x9a   : > { %vm212_vm0 = vcmp.eq.s32.totalorder %v195_v53, %v211_v55  ;;  %vm200_vm1 = vcmp.eq.s32.totalorder %v195_v53, %v199_v54  ;;  %vm213_vm5 = vcmp.eq.s32.totalorder %v196_v56, %v211_v55  ;;  %vm201_vm6 = vcmp.eq.s32.totalorder %v196_v56, %v199_v54 }
  0x9e   : > { %v204_v57 = vpop.permute.xlu0 %203 }
  0x9f   : > { %vm205_vm2 = vcmp.eq.s32.totalorder %v195_v53, %v204_v57  ;;  %vm206_vm3 = vcmp.eq.s32.totalorder %v196_v56, %v204_v57 }
  0xa0   : > { %vm207_vm4 = vmor %vm200_vm1, %vm205_vm2 }
  0xa1   : > { %vm214_vm7 = vmor %vm207_vm4, %vm212_vm0 }
  0xa2   : > { %vm208_vm8 = vmor %vm201_vm6, %vm206_vm3 }
  0xa3   : > { %vm215_vm9 = vmor %vm208_vm8, %vm213_vm5 }
  0xa4   : > { %435 = vmatprep.mubr.msk.f32.mxu0 %vm215_vm9, %v626_v58 }
  0xa5   : > { %436 = vmatmul.mubr.msk.f32.vlgmr.msra.gmra.mrb[0].mxu0 %vm214_vm7, %v626_v58 }
 0x178   : > { %v475_v59 = vpop.f32.mrb[0].mxu0 }
 0x179   : > { %v476_v60 = vpop.f32.mrb[1].mxu0 }
 0x17a   : > { %v477_v61 = vadd.f32 %v476_v60, %v475_v59 }
 0x17c   : > { %v323_v62 = vsel %vm322_vm10, %v477_v61, 0.0 }
 0x17d   : > { %324 = vadd.xlane.f32.xlu1 %v323_v62 }
 0x20a   : > { %v325_v63 = vpop.xlane.xlu1 %324 }
 0x20b   : > { %v327_v0 = vmul.f32 0.03125, %v325_v63 }
 0x20d   : > { %v328_v1 = vsub.f32 %v477_v61, %v327_v0 }
 0x20f   : > { %v329_v2 = vmul.f32 %v328_v1, %v328_v1 }
 0x211   : > { %v330_v3 = vsel %vm322_vm10, %v329_v2, 0.0 }
 0x212   : > { %331 = vadd.xlane.f32.xlu0 %v330_v3 }
 0x29f   : > { %v332_v4 = vpop.xlane.xlu0 %331 }
 0x2a0   : > { %v333_v5 = vmul.f32 0.03125, %v332_v4 }
 0x2a2   : > { %v334_v6 = vadd.f32 1e-12, %v333_v5 }
 0x2a4   : > { %557 = vrsqrt.f32 %v334_v6 }
 0x2ae   : > { %v558_v7 = vpop.eup %557 }
 0x2af   : > { %v336_v9 = vmul.f32 %v558_v7, %v328_v1 }
 0x2b1   : > { %v344_v11 = vmul.f32 %v437_v8, %v336_v9 }
 0x2b3   : > { %v352_v12 = vadd.f32 %v438_v10, %v344_v11 }
 0x2b5   : > { %353 = vst.msk [vmem:[%s188_s9] sm:$0xff] %vm322_vm10, %v352_v12 }
 0x2b6   : > { %572 = shalt.err (!%p569_p3)
}
 0x2b7   : > { %s573_s27 = scalar_lea.hbm %s815_s14, 128  ;;  %s577_s30 = scalar_lea.hbm %s862_s4, 256 }
 0x2b8   : > { %p574_p4 = scmp.ne.s32.totalorder %s815_s14, %s573_s27  ;;  %p578_p9 = scmp.lt.u32.totalorder %s815_s14, %s862_s4 }
 0x2b9   : > { %p579_p10 = scmp.lt.u32.totalorder %s577_s30, %s573_s27  ;;  %p581_p12 = scmp.lt.u32.totalorder %s573_s27, %s815_s14 }
 0x2ba   : > { %p575_p7 = pnand %p574_p4, %p691_p5 }
 0x2bb   : > { %p580_p11 = por %p579_p10, %p578_p9 }
 0x2bc   : > { %p576_p8 = pneg %p575_p7 }
 0x2bd   : > { %p582_p13 = por %p581_p12, %p580_p11 }
 0x2bf   : > { %p583_p0 = pnand %p582_p13, %p576_p8 }
 0x2c1   : > { %586 = shalt.err (!%p583_p0)
}
 0x2c2   : > { %510 = dma.vmem_to_hbm [thread:$0]  (%p691_p5), %s817_s10, 128, %s815_s14, %s355_s20  }
 0x2c3 PF: > { %p516_p1 = scmp.ge.s32.totalorder %s621_s18, 2  ;;  %s380_s7 = sand.u32 1, %s609_s15  }
 0x2c4   : > { %s381_s8 = scalar_lea.sflag [#allocation3], %s380_s7 }
 0x2c5   : > { %p513_p2 = pnand %p516_p1, %p695_p6 }
 0x2c7   : > { %604 = dma.done.wait (!%p513_p2), %s381_s8, 128  }
 0x2c8   : > { %606 = vsyncadd (!%p513_p2), %s381_s8, 4294967168  ;;  %p14_p3 = scmp.ge.s32.totalorder %s678_s21, 4   ;;  %s865_s15 = smov %s613_s16 }
 0x2c9   : > { %s866_s16 = smov %s617_s17  ;;  %s867_s17 = smov %s689_s24 }
 0x2ca   : > { %s868_s18 = smov %s678_s21  ;;  %16 = sbr.rel (!%p14_p3) target bundleno = 3 (0x3), region = 71 }
 0x2d1   :  { %386 = vsyncpa [#allocation3], 1 }
 0x2d2   :  { %388 = vsyncpa [#allocation3 + $0x1], 1 }

</bundles_post_ra>
